<compile_context>
chip_gen: v6e
topology: v6e:2x2x1
jax: 0.10.0
libtpu: 0.0.40
codegen_flags: <defaults>
</compile_context>

<pallas_src>
import jax
import jax.numpy as jnp
from jax.experimental import pallas as pl
from jax.experimental.pallas import tpu as pltpu


_LANE = 128


def _round_up(n, m):
    return -(-n // m) * m


def _pad2d(a, rows, cols):
    r, c = a.shape
    return jnp.pad(a, ((0, rows - r), (0, cols - c)))


def _supports_single_buffered():
    """True iff this jax exposes BlockSpec(pipeline_mode=pl.Buffered(n))."""
    if not hasattr(pl, "Buffered"):
        return False
    try:
        pl.BlockSpec((8, 128), lambda i: (0, 0), pipeline_mode=pl.Buffered(1))
    except TypeError:
        return False
    return True


def _make_multivae_kernel(n_q_hidden, n_p):
    """Kernel closed over the (static) layer counts."""

    def kernel(*refs):
        # refs = [x,
        #         (wq_i, bq_i) * n_q_hidden,
        #         w_mulv, b_mulv,
        #         (wp_i, bp_i) * n_p,
        #         out, mu, logvar]
        x_ref = refs[0]
        idx = 1
        q_hidden = []
        for _ in range(n_q_hidden):
            q_hidden.append((refs[idx], refs[idx + 1]))
            idx += 2
        w_ml_ref, b_ml_ref = refs[idx], refs[idx + 1]
        idx += 2
        p_layers = []
        for _ in range(n_p):
            p_layers.append((refs[idx], refs[idx + 1]))
            idx += 2
        out_ref, mu_ref, logvar_ref = refs[idx], refs[idx + 1], refs[idx + 2]

        x = x_ref[...]                                    # bf16 [tb, D_in_pad]

        # F.normalize(x, dim=1, eps=1e-12), commuted past the first matmul:
        #   normalize(x) @ W == rsqrt(max(sum(x^2), eps^2)) * (x @ W)
        # Sum of squares is accumulated in f32 from the bf16 tile (zero-padded
        # rows/columns contribute nothing).  One rsqrt (EUP) + one [tb, hidden]
        # multiply instead of scaling the full [tb, D_in] input.
        sq = jnp.sum(jnp.square(x.astype(jnp.float32)), axis=1, keepdims=True)
        scale = jax.lax.rsqrt(jnp.maximum(sq, 1e-24))     # [tb, 1] f32

        # Dropout: identity in eval mode.

        scale_applied = False
        h = x                                             # bf16 activations
        for w_ref, b_ref in q_hidden:
            acc = jnp.dot(h, w_ref[...], preferred_element_type=jnp.float32)
            if not scale_applied:
                acc = acc * scale
                scale_applied = True
            h = jnp.tanh(acc + b_ref[...]).astype(jnp.bfloat16)

        # Fused mu | logvar matmul: one MXU push with N = 2*latent_pad; the
        # split is a free, 128-aligned static slice.
        acc = jnp.dot(h, w_ml_ref[...], preferred_element_type=jnp.float32)
        if not scale_applied:
            acc = acc * scale
            scale_applied = True
        ml = acc + b_ml_ref[...]
        latent_pad = mu_ref.shape[-1]
        mu = ml[:, :latent_pad]
        logvar = ml[:, latent_pad:]
        mu_ref[...] = mu
        logvar_ref[...] = logvar

        # Reparameterization (eval mode): z = mu.
        z = mu.astype(jnp.bfloat16)

        # Decoder stack; last layer un-activated, written back as bf16 logits.
        for i, (w_ref, b_ref) in enumerate(p_layers):
            acc = jnp.dot(z, w_ref[...],
                          preferred_element_type=jnp.float32) + b_ref[...]
            if i != n_p - 1:
                z = jnp.tanh(acc).astype(jnp.bfloat16)
            else:
                out_ref[...] = acc.astype(out_ref.dtype)

    return kernel


def prepare_multivae_params(q_weights, q_biases, p_weights, p_biases, latent,
                            lane=_LANE):
    """Pad / cast the weights ONCE (hoisted out of the per-call path).

    q_weights/p_weights: [in, out] f32; q_biases/p_biases: [1, out] f32.
    """
    def pad_dim(n):
        return _round_up(n, lane)

    # Hidden encoder layers (all but the last q layer): Linear -> tanh.
    q_hidden = []
    for w, b in zip(q_weights[:-1], q_biases[:-1]):
        di, do = w.shape
        q_hidden.append(
            (_pad2d(w, pad_dim(di), pad_dim(do)).astype(jnp.bfloat16),
             _pad2d(b, 1, pad_dim(do)).astype(jnp.float32)))

    # Last encoder layer: split into (mu | logvar) halves, pad each half to a
    # 128 multiple, then fuse back into one [in_pad, 2*latent_pad] weight.
    wq_last, bq_last = q_weights[-1], q_biases[-1]
    latent_pad = pad_dim(latent)
    di = wq_last.shape[0]
    w_mu = _pad2d(wq_last[:, :latent], pad_dim(di), latent_pad)
    w_lv = _pad2d(wq_last[:, latent:], pad_dim(di), latent_pad)
    b_mu = _pad2d(bq_last[:, :latent], 1, latent_pad)
    b_lv = _pad2d(bq_last[:, latent:], 1, latent_pad)
    w_mulv = jnp.concatenate([w_mu, w_lv], axis=1).astype(jnp.bfloat16)
    b_mulv = jnp.concatenate([b_mu, b_lv], axis=1).astype(jnp.float32)

    p_layers = []
    for w, b in zip(p_weights, p_biases):
        di, do = w.shape
        p_layers.append(
            (_pad2d(w, pad_dim(di), pad_dim(do)).astype(jnp.bfloat16),
             _pad2d(b, 1, pad_dim(do)).astype(jnp.float32)))

    return dict(
        q_hidden=q_hidden,
        w_mulv=w_mulv,
        b_mulv=b_mulv,
        p_layers=p_layers,
        latent=latent,
        latent_pad=latent_pad,
        d_in=q_weights[0].shape[0],
        d_out=p_weights[-1].shape[1],
        lane=lane,
    )


def _estimate_vmem_bytes(params, tb, d_in_pad, d_out_pad, single_buffered):
    """Rough VMEM footprint of this call, used to set vmem_limit_bytes."""
    latent_pad = params["latent_pad"]

    const_bytes = 0
    consts = list(params["q_hidden"]) + [(params["w_mulv"], params["b_mulv"])] \
        + list(params["p_layers"])
    for w, b in consts:
        const_bytes += w.size * w.dtype.itemsize + b.size * b.dtype.itemsize
    const_bytes *= 1 if single_buffered else 2

    io_bytes = 2 * (tb * d_in_pad * 2)            # x tile (bf16, 2 buffers)
    io_bytes += 2 * (tb * d_out_pad * 2)          # logits tile (bf16, 2 buf)
    io_bytes += 2 * 2 * (tb * latent_pad * 4)     # mu, logvar tiles (f32)

    widths = [d_in_pad, d_out_pad, 2 * latent_pad]
    widths += [w.shape[1] for w, _ in params["q_hidden"]]
    widths += [w.shape[1] for w, _ in params["p_layers"]]
    act_bytes = 4 * tb * max(widths) * 4          # activation temporaries

    return const_bytes + io_bytes + act_bytes


def multivae_forward(x, params, *, tb_max=128, vmem_limit_bytes=None):
    """x: [B, D_in] float.  params: output of prepare_multivae_params.

    Returns (logits [B, n_items] (bf16->sliced), mu [B, latent], logvar [B, latent]).
    """
    B, D_in = x.shape
    lane = params["lane"]
    assert D_in == params["d_in"], "input width does not match the q-network"

    d_in_pad = _round_up(D_in, lane)
    d_out = params["d_out"]
    d_out_pad = _round_up(d_out, lane)
    latent = params["latent"]
    latent_pad = params["latent_pad"]

    # Adaptive batch tile: never pad a tiny batch up to 128 rows; when the
    # batch allows, use >= 2 grid steps so the "parallel" axis can span both
    # v7x TensorCores (a ~0.35us/step no-op on single-TC v5e/v6e).
    tb = min(tb_max, _round_up(B, 8))
    if _round_up(B, tb) // tb < 2 and tb >= 16:
        tb = _round_up(tb // 2, 8)
    B_pad = _round_up(B, tb)

    x_p = _pad2d(x.astype(jnp.bfloat16), B_pad, d_in_pad)

    q_hidden = params["q_hidden"]
    p_layers = params["p_layers"]

    inputs = [x_p]
    for w, b in q_hidden:
        inputs += [w, b]
    inputs += [params["w_mulv"], params["b_mulv"]]
    for w, b in p_layers:
        inputs += [w, b]

    kernel = _make_multivae_kernel(len(q_hidden), len(p_layers))

    out_shape = (
        jax.ShapeDtypeStruct((B_pad, d_out_pad), jnp.bfloat16),   # logits
        jax.ShapeDtypeStruct((B_pad, latent_pad), jnp.float32),   # mu
        jax.ShapeDtypeStruct((B_pad, latent_pad), jnp.float32),   # logvar
    )
    out_specs = (
        pl.BlockSpec((tb, d_out_pad), lambda i: (i, 0)),
        pl.BlockSpec((tb, latent_pad), lambda i: (i, 0)),
        pl.BlockSpec((tb, latent_pad), lambda i: (i, 0)),
    )

    def call(single_buffered):
        def const_spec(arr):
            # Grid-invariant operand: single resident VMEM buffer if possible.
            if single_buffered:
                return pl.BlockSpec(arr.shape, lambda i: (0, 0),
                                    pipeline_mode=pl.Buffered(1))
            return pl.BlockSpec(arr.shape, lambda i: (0, 0))

        in_specs = [pl.BlockSpec((tb, d_in_pad), lambda i: (i, 0))]
        for w, b in q_hidden:
            in_specs += [const_spec(w), const_spec(b)]
        in_specs += [const_spec(params["w_mulv"]), const_spec(params["b_mulv"])]
        for w, b in p_layers:
            in_specs += [const_spec(w), const_spec(b)]

        if vmem_limit_bytes is None:
            est = _estimate_vmem_bytes(params, tb, d_in_pad, d_out_pad,
                                       single_buffered)
            # 8 MiB margin, floor 32 MiB, capped below v5e/v6e's 128 MiB.
            # (On v7x at huge n_items, K/N-tile the big matmuls instead of
            # raising this -- see TODO at the top of the file.)
            limit = min(max(est + (8 << 20), 32 << 20), 112 << 20)
        else:
            limit = vmem_limit_bytes

        return pl.pallas_call(
            kernel,
            grid=(B_pad // tb,),
            in_specs=in_specs,
            out_specs=out_specs,
            out_shape=out_shape,
            compiler_params=pltpu.CompilerParams(
                dimension_semantics=("parallel",),
                vmem_limit_bytes=int(limit),
            ),
        )(*inputs)

    if _supports_single_buffered():
        try:
            out_p, mu_p, lv_p = call(True)
        except (pltpu.LoweringException, NotImplementedError):
            # Buffered(1) not lowerable on this jax/libtpu combo: retry with
            # default double-buffered weights.  A genuine lowering error will
            # re-raise from the fallback build as well.
            out_p, mu_p, lv_p = call(False)
    else:
        out_p, mu_p, lv_p = call(False)

    return out_p[:B, :d_out], mu_p[:B, :latent], lv_p[:B, :latent]


# ----------------------------------------------------------------------------
# Parameter construction (mirrors the torch module's init) and references.
# ----------------------------------------------------------------------------

def _xavier_uniform(key, fan_out, fan_in):
    bound = (6.0 / (fan_in + fan_out)) ** 0.5
    # torch stores Linear weight as [out, in]; sample in that shape, then
    # transpose to [in, out] for the kernel.
    w = jax.random.uniform(key, (fan_out, fan_in), jnp.float32, -bound, bound)
    return jnp.transpose(w)


def build_params(key, p_dims):
    q_dims = p_dims[::-1]
    latent = q_dims[-1]
    temp_q = q_dims[:-1] + [q_dims[-1] * 2]

    q_weights, q_biases, p_weights, p_biases = [], [], [], []
    for d_in, d_out in zip(temp_q[:-1], temp_q[1:]):
        key, sub = jax.random.split(key)
        q_weights.append(_xavier_uniform(sub, d_out, d_in))
        q_biases.append(jnp.zeros((1, d_out), jnp.float32))
    for d_in, d_out in zip(p_dims[:-1], p_dims[1:]):
        key, sub = jax.random.split(key)
        p_weights.append(_xavier_uniform(sub, d_out, d_in))
        p_biases.append(jnp.zeros((1, d_out), jnp.float32))
    return q_weights, q_biases, p_weights, p_biases, latent


def reference_forward_f32(x, q_w, q_b, p_w, p_b, latent):
    """Pure-JAX f32 reference of the eval-mode forward."""
    sq = jnp.sum(x * x, axis=1, keepdims=True)
    h = x * jax.lax.rsqrt(jnp.maximum(sq, 1e-24))
    for i, (w, b) in enumerate(zip(q_w, q_b)):
        h = h @ w + b
        if i != len(q_w) - 1:
            h = jnp.tanh(h)
    mu, logvar = h[:, :latent], h[:, latent:]
    z = mu
    for i, (w, b) in enumerate(zip(p_w, p_b)):
        z = z @ w + b
        if i != len(p_w) - 1:
            z = jnp.tanh(z)
    return z, mu, logvar


def reference_forward_bf16(x, q_w, q_b, p_w, p_b, latent):
    """Pure-JAX reference mimicking the kernel numerics (bf16 operands,
    f32 accumulation, L2 scale commuted past the first matmul)."""
    def mm(a, w):
        return jnp.dot(a.astype(jnp.bfloat16), w.astype(jnp.bfloat16),
                       preferred_element_type=jnp.float32)

    xb = x.astype(jnp.bfloat16)
    sq = jnp.sum(jnp.square(xb.astype(jnp.float32)), axis=1, keepdims=True)
    scale = jax.lax.rsqrt(jnp.maximum(sq, 1e-24))

    h = xb
    scaled = False
    mu = logvar = None
    for i, (w, b) in enumerate(zip(q_w, q_b)):
        acc = mm(h, w)
        if not scaled:
            acc = acc * scale
            scaled = True
        acc = acc + b
        if i != len(q_w) - 1:
            h = jnp.tanh(acc).astype(jnp.bfloat16)
        else:
            mu, logvar = acc[:, :latent], acc[:, latent:]

    z = mu.astype(jnp.bfloat16)
    out = None
    for i, (w, b) in enumerate(zip(p_w, p_b)):
        acc = mm(z, w) + b
        if i != len(p_w) - 1:
            z = jnp.tanh(acc).astype(jnp.bfloat16)
        else:
            out = acc
    return out, mu, logvar


if __name__ == "__main__":
    # p_dims = [latent, hidden, n_items]; deliberately not 128-aligned so the
    # padding, fused mu|logvar, and commuted-normalize paths are exercised.
    p_dims = [24, 72, 200]
    B = 8

    key = jax.random.PRNGKey(0)
    key, k_x, k_p = jax.random.split(key, 3)
    x = jax.random.uniform(k_x, (B, p_dims[-1]), jnp.float32)

    q_w, q_b, p_w, p_b, latent = build_params(k_p, p_dims)
    params = prepare_multivae_params(q_w, q_b, p_w, p_b, latent)

    out, mu, logvar = multivae_forward(x, params)
    jax.block_until_ready((out, mu, logvar))
    out_f32 = out.astype(jnp.float32)

    # Check vs. a pure-JAX reference using the same numerics as the kernel
    # (bf16 operands, f32 accumulation, commuted L2 normalization).
    o1, m1, l1 = reference_forward_bf16(x, q_w, q_b, p_w, p_b, latent)
    o1 = o1.astype(jnp.bfloat16).astype(jnp.float32)  # kernel emits bf16 logits
    assert jnp.allclose(out_f32, o1, atol=1e-2, rtol=1e-2)
    assert jnp.allclose(mu, m1, atol=1e-2, rtol=1e-2)
    assert jnp.allclose(logvar, l1, atol=1e-2, rtol=1e-2)

    # Looser sanity check vs. the full-f32 reference (bf16 is intentional).
    o2, m2, l2 = reference_forward_f32(x, q_w, q_b, p_w, p_b, latent)
    assert jnp.allclose(out_f32, o2, atol=8e-2, rtol=8e-2)
    assert jnp.allclose(mu, m2, atol=8e-2, rtol=8e-2)
    assert jnp.allclose(logvar, l2, atol=8e-2, rtol=8e-2)

    print("KERNEL_OK")
</pallas_src>

<mosaic_0001>
module attributes {stable_mosaic.version = 11 : i64} {
  func.func @kernel(%arg0: i32, %arg1: memref<8x256xbf16, #tpu.memory_space<vmem>>, %arg2: memref<256x128xbf16, #tpu.memory_space<vmem>>, %arg3: memref<1x128xf32, #tpu.memory_space<vmem>>, %arg4: memref<128x256xbf16, #tpu.memory_space<vmem>>, %arg5: memref<1x256xf32, #tpu.memory_space<vmem>>, %arg6: memref<128x128xbf16, #tpu.memory_space<vmem>>, %arg7: memref<1x128xf32, #tpu.memory_space<vmem>>, %arg8: memref<128x256xbf16, #tpu.memory_space<vmem>>, %arg9: memref<1x256xf32, #tpu.memory_space<vmem>>, %arg10: memref<8x256xbf16, #tpu.memory_space<vmem>>, %arg11: memref<8x128xf32, #tpu.memory_space<vmem>>, %arg12: memref<8x128xf32, #tpu.memory_space<vmem>>) attributes {dimension_semantics = [#tpu.dimension_semantics<parallel>], iteration_bounds = array<i64: 1>, scalar_prefetch = 0 : i64, scratch_operands = 0 : i64, tpu.core_type = #tpu.core_type<tc>, window_params = [{transform_indices = @transform_0, window_bounds = array<i64: 8, 256>}, {pipeline_mode = #tpu.pipeline_mode<synchronous>, transform_indices = @transform_1, window_bounds = array<i64: 256, 128>}, {pipeline_mode = #tpu.pipeline_mode<synchronous>, transform_indices = @transform_2, window_bounds = array<i64: 1, 128>}, {pipeline_mode = #tpu.pipeline_mode<synchronous>, transform_indices = @transform_3, window_bounds = array<i64: 128, 256>}, {pipeline_mode = #tpu.pipeline_mode<synchronous>, transform_indices = @transform_4, window_bounds = array<i64: 1, 256>}, {pipeline_mode = #tpu.pipeline_mode<synchronous>, transform_indices = @transform_5, window_bounds = array<i64: 128, 128>}, {pipeline_mode = #tpu.pipeline_mode<synchronous>, transform_indices = @transform_6, window_bounds = array<i64: 1, 128>}, {pipeline_mode = #tpu.pipeline_mode<synchronous>, transform_indices = @transform_7, window_bounds = array<i64: 128, 256>}, {pipeline_mode = #tpu.pipeline_mode<synchronous>, transform_indices = @transform_8, window_bounds = array<i64: 1, 256>}, {transform_indices = @transform_9, window_bounds = array<i64: 8, 256>}, {transform_indices = @transform_10, window_bounds = array<i64: 8, 128>}, {transform_indices = @transform_11, window_bounds = array<i64: 8, 128>}]} {
    %c0 = arith.constant 0 : index
    %c0_0 = arith.constant 0 : index
    %0 = vector.load %arg1[%c0, %c0_0] : memref<8x256xbf16, #tpu.memory_space<vmem>>, vector<8x256xbf16>
    %1 = arith.extf %0 : vector<8x256xbf16> to vector<8x256xf32>
    %2 = arith.mulf %1, %1 : vector<8x256xf32>
    %cst = arith.constant dense<0.000000e+00> : vector<8xf32>
    %3 = vector.multi_reduction <add>, %2, %cst [1] : vector<8x256xf32> to vector<8xf32>
    %4 = vector.shape_cast %3 : vector<8xf32> to vector<8x1xf32>
    %cst_1 = arith.constant 1.000000e-24 : f32
    %5 = vector.broadcast %cst_1 : f32 to vector<8x1xf32>
    %6 = arith.maximumf %4, %5 : vector<8x1xf32>
    %7 = math.rsqrt %6 : vector<8x1xf32>
    %c0_2 = arith.constant 0 : index
    %c0_3 = arith.constant 0 : index
    %8 = vector.load %arg2[%c0_2, %c0_3] : memref<256x128xbf16, #tpu.memory_space<vmem>>, vector<256x128xbf16>
    %cst_4 = arith.constant dense<0.000000e+00> : vector<8x128xf32>
    %9 = tpu.matmul %0, %8, %cst_4 {dimension_numbers = #tpu.dot_dimension_numbers<[1], [0], [0], [1], [0, 0, 1, 1], [], []>} : vector<8x256xbf16>, vector<256x128xbf16>, vector<8x128xf32> -> vector<8x128xf32>
    %10 = vector.broadcast %7 : vector<8x1xf32> to vector<8x128xf32>
    %11 = arith.mulf %9, %10 : vector<8x128xf32>
    %c0_5 = arith.constant 0 : index
    %c0_6 = arith.constant 0 : index
    %12 = vector.load %arg3[%c0_5, %c0_6] : memref<1x128xf32, #tpu.memory_space<vmem>>, vector<1x128xf32>
    %13 = vector.broadcast %12 : vector<1x128xf32> to vector<8x128xf32>
    %14 = arith.addf %11, %13 : vector<8x128xf32>
    %15 = math.tanh %14 : vector<8x128xf32>
    %16 = arith.truncf %15 : vector<8x128xf32> to vector<8x128xbf16>
    %c0_7 = arith.constant 0 : index
    %c0_8 = arith.constant 0 : index
    %17 = vector.load %arg4[%c0_7, %c0_8] : memref<128x256xbf16, #tpu.memory_space<vmem>>, vector<128x256xbf16>
    %cst_9 = arith.constant dense<0.000000e+00> : vector<8x256xf32>
    %18 = tpu.matmul %16, %17, %cst_9 {dimension_numbers = #tpu.dot_dimension_numbers<[1], [0], [0], [1], [0, 0, 1, 1], [], []>} : vector<8x128xbf16>, vector<128x256xbf16>, vector<8x256xf32> -> vector<8x256xf32>
    %c0_10 = arith.constant 0 : index
    %c0_11 = arith.constant 0 : index
    %19 = vector.load %arg5[%c0_10, %c0_11] : memref<1x256xf32, #tpu.memory_space<vmem>>, vector<1x256xf32>
    %20 = vector.broadcast %19 : vector<1x256xf32> to vector<8x256xf32>
    %21 = arith.addf %18, %20 : vector<8x256xf32>
    %22 = vector.extract_strided_slice %21 {offsets = [0, 0], sizes = [8, 128], strides = [1, 1]} : vector<8x256xf32> to vector<8x128xf32>
    %23 = vector.extract_strided_slice %21 {offsets = [0, 128], sizes = [8, 128], strides = [1, 1]} : vector<8x256xf32> to vector<8x128xf32>
    %c0_12 = arith.constant 0 : index
    %c0_13 = arith.constant 0 : index
    %24 = vector.load %arg11[%c0_12, %c0_13] : memref<8x128xf32, #tpu.memory_space<vmem>>, vector<8x128xf32>
    tpu.vector_store %arg11[%c0_12, %c0_13], %22 {strides = array<i32>} : memref<8x128xf32, #tpu.memory_space<vmem>>, vector<8x128xf32>,
    %c0_14 = arith.constant 0 : index
    %c0_15 = arith.constant 0 : index
    %25 = vector.load %arg12[%c0_14, %c0_15] : memref<8x128xf32, #tpu.memory_space<vmem>>, vector<8x128xf32>
    tpu.vector_store %arg12[%c0_14, %c0_15], %23 {strides = array<i32>} : memref<8x128xf32, #tpu.memory_space<vmem>>, vector<8x128xf32>,
    %26 = arith.truncf %22 : vector<8x128xf32> to vector<8x128xbf16>
    %c0_16 = arith.constant 0 : index
    %c0_17 = arith.constant 0 : index
    %27 = vector.load %arg6[%c0_16, %c0_17] : memref<128x128xbf16, #tpu.memory_space<vmem>>, vector<128x128xbf16>
    %cst_18 = arith.constant dense<0.000000e+00> : vector<8x128xf32>
    %28 = tpu.matmul %26, %27, %cst_18 {dimension_numbers = #tpu.dot_dimension_numbers<[1], [0], [0], [1], [0, 0, 1, 1], [], []>} : vector<8x128xbf16>, vector<128x128xbf16>, vector<8x128xf32> -> vector<8x128xf32>
    %c0_19 = arith.constant 0 : index
    %c0_20 = arith.constant 0 : index
    %29 = vector.load %arg7[%c0_19, %c0_20] : memref<1x128xf32, #tpu.memory_space<vmem>>, vector<1x128xf32>
    %30 = vector.broadcast %29 : vector<1x128xf32> to vector<8x128xf32>
    %31 = arith.addf %28, %30 : vector<8x128xf32>
    %32 = math.tanh %31 : vector<8x128xf32>
    %33 = arith.truncf %32 : vector<8x128xf32> to vector<8x128xbf16>
    %c0_21 = arith.constant 0 : index
    %c0_22 = arith.constant 0 : index
    %34 = vector.load %arg8[%c0_21, %c0_22] : memref<128x256xbf16, #tpu.memory_space<vmem>>, vector<128x256xbf16>
    %cst_23 = arith.constant dense<0.000000e+00> : vector<8x256xf32>
    %35 = tpu.matmul %33, %34, %cst_23 {dimension_numbers = #tpu.dot_dimension_numbers<[1], [0], [0], [1], [0, 0, 1, 1], [], []>} : vector<8x128xbf16>, vector<128x256xbf16>, vector<8x256xf32> -> vector<8x256xf32>
    %c0_24 = arith.constant 0 : index
    %c0_25 = arith.constant 0 : index
    %36 = vector.load %arg9[%c0_24, %c0_25] : memref<1x256xf32, #tpu.memory_space<vmem>>, vector<1x256xf32>
    %37 = vector.broadcast %36 : vector<1x256xf32> to vector<8x256xf32>
    %38 = arith.addf %35, %37 : vector<8x256xf32>
    %39 = arith.truncf %38 : vector<8x256xf32> to vector<8x256xbf16>
    %c0_26 = arith.constant 0 : index
    %c0_27 = arith.constant 0 : index
    %40 = vector.load %arg10[%c0_26, %c0_27] : memref<8x256xbf16, #tpu.memory_space<vmem>>, vector<8x256xbf16>
    tpu.vector_store %arg10[%c0_26, %c0_27], %39 {strides = array<i32>} : memref<8x256xbf16, #tpu.memory_space<vmem>>, vector<8x256xbf16>,
    return
  }
  func.func @transform_0(%arg0: i32) -> (i32, i32) {
    %c0_i32 = arith.constant 0 : i32
    %c0_i32_0 = arith.constant 0 : i32
    return %arg0, %c0_i32 : i32, i32
  }
  func.func @transform_1(%arg0: i32) -> (i32, i32) {
    %c0_i32 = arith.constant 0 : i32
    %c0_i32_0 = arith.constant 0 : i32
    %c0_i32_1 = arith.constant 0 : i32
    return %c0_i32, %c0_i32_0 : i32, i32
  }
  func.func @transform_2(%arg0: i32) -> (i32, i32) {
    %c0_i32 = arith.constant 0 : i32
    %c0_i32_0 = arith.constant 0 : i32
    %c0_i32_1 = arith.constant 0 : i32
    return %c0_i32, %c0_i32_0 : i32, i32
  }
  func.func @transform_3(%arg0: i32) -> (i32, i32) {
    %c0_i32 = arith.constant 0 : i32
    %c0_i32_0 = arith.constant 0 : i32
    %c0_i32_1 = arith.constant 0 : i32
    return %c0_i32, %c0_i32_0 : i32, i32
  }
  func.func @transform_4(%arg0: i32) -> (i32, i32) {
    %c0_i32 = arith.constant 0 : i32
    %c0_i32_0 = arith.constant 0 : i32
    %c0_i32_1 = arith.constant 0 : i32
    return %c0_i32, %c0_i32_0 : i32, i32
  }
  func.func @transform_5(%arg0: i32) -> (i32, i32) {
    %c0_i32 = arith.constant 0 : i32
    %c0_i32_0 = arith.constant 0 : i32
    %c0_i32_1 = arith.constant 0 : i32
    return %c0_i32, %c0_i32_0 : i32, i32
  }
  func.func @transform_6(%arg0: i32) -> (i32, i32) {
    %c0_i32 = arith.constant 0 : i32
    %c0_i32_0 = arith.constant 0 : i32
    %c0_i32_1 = arith.constant 0 : i32
    return %c0_i32, %c0_i32_0 : i32, i32
  }
  func.func @transform_7(%arg0: i32) -> (i32, i32) {
    %c0_i32 = arith.constant 0 : i32
    %c0_i32_0 = arith.constant 0 : i32
    %c0_i32_1 = arith.constant 0 : i32
    return %c0_i32, %c0_i32_0 : i32, i32
  }
  func.func @transform_8(%arg0: i32) -> (i32, i32) {
    %c0_i32 = arith.constant 0 : i32
    %c0_i32_0 = arith.constant 0 : i32
    %c0_i32_1 = arith.constant 0 : i32
    return %c0_i32, %c0_i32_0 : i32, i32
  }
  func.func @transform_9(%arg0: i32) -> (i32, i32) {
    %c0_i32 = arith.constant 0 : i32
    %c0_i32_0 = arith.constant 0 : i32
    return %arg0, %c0_i32 : i32, i32
  }
  func.func @transform_10(%arg0: i32) -> (i32, i32) {
    %c0_i32 = arith.constant 0 : i32
    %c0_i32_0 = arith.constant 0 : i32
    return %arg0, %c0_i32 : i32, i32
  }
  func.func @transform_11(%arg0: i32) -> (i32, i32) {
    %c0_i32 = arith.constant 0 : i32
    %c0_i32_0 = arith.constant 0 : i32
    return %arg0, %c0_i32 : i32, i32
  }
}

</mosaic_0001>

<bundles_post_ra>
// kernel: tpu_custom_call.1
= control target key start
LH: loop header
LB: loop body
LE: loop exit
PB: predicated region body
PF: predicated region fallthrough
CT: control target
= control target key end

     0   :  { %17 = vsyncpa [#allocation3], 0  ;;  %s1268_s0 = inlined_call_operand.hbm [shape: bf16[8,256], index: 0, kind: input, shape index: {}]   ;;  %s1269_s1 = inlined_call_operand.hbm [shape: bf16[256,128], index: 1, kind: input, shape index: {}]   ;;  %s1270_s2 = inlined_call_operand.vmem [shape: f32[1,128], index: 2, kind: input, shape index: {}]   ;;  %s1271_s3 = inlined_call_operand.hbm [shape: bf16[128,256], index: 3, kind: input, shape index: {}]   ;;  %s1272_s4 = inlined_call_operand.vmem [shape: f32[1,256], index: 4, kind: input, shape index: {}]   ;;  %s1273_s5 = inlined_call_operand.hbm [shape: bf16[128,128], index: 5, kind: input, shape index: {}]   ;;  %s1274_s6 = inlined_call_operand.vmem [shape: f32[1,128], index: 6, kind: input, shape index: {}]   ;;  %s1275_s7 = inlined_call_operand.hbm [shape: bf16[128,256], index: 7, kind: input, shape index: {}]   ;;  %s1276_s8 = inlined_call_operand.vmem [shape: f32[1,256], index: 8, kind: input, shape index: {}]   ;;  %s1277_s9 = inlined_call_operand.hbm [shape: bf16[8,256], index: 9, kind: output, shape index: {0}]   ;;  %s1278_s10 = inlined_call_operand.hbm [shape: f32[8,128], index: 10, kind: output, shape index: {1}]   ;;  %s1279_s11 = inlined_call_operand.hbm [shape: f32[8,128], index: 11, kind: output, shape index: {2}]  }
   0x1   :  { %18 = vsyncpa [#allocation6], 0 }
   0x2   :  { %19 = vsyncpa [#allocation9], 0 }
   0x3   :  { %20 = vsyncpa [#allocation4], 0 }
   0x4   :  { %21 = vsyncpa [#allocation13], 0  ;;  %s1145_s17 = smov [#allocation5]  }
   0x5   :  { %s37_s18 = sshll.u32 %s1145_s17, 4  ;;  %s38_s18 = int_to_ptr.vmem [resolvable:$true] %s37_s18 }
   0x6   :  { %s983_s19 = scalar_lea.vmem %s38_s18, 2048  ;;  %p988_p1 = scmp.lt.s32.totalorder %s38_s18, %s38_s18 }
   0x7   :  { %p984_p0 = scmp.ne.s32.totalorder %s38_s18, %s983_s19  ;;  %p989_p2 = scmp.lt.s32.totalorder %s983_s19, %s983_s19 }
   0x9   :  { %p990_p3 = por %p989_p2, %p988_p1 }
   0xb   :  { %p991_p4 = pnand %p990_p3, %p984_p0 }
   0xd   :  { %994 = shalt.err (!%p991_p4)
}
   0xe   :  { %s1146_s20 = smov 64   ;;  %s1147_s21 = smov 4  }
   0xf   :  { %43 = dma.hbm_to_vmem [thread:$0]  %s1269_s1, 2048, %s38_s18, [#allocation6], %s1146_s20, %s1146_s20, %s1147_s21  }
  0x10   :  { %s1148_s24 = smov [#allocation8]   ;;  %s1149_s26 = smov [#allocation2]  }
  0x11   :  { %s65_s25 = sshll.u32 %s1148_s24, 4  ;;  %s28_s27 = sshll.u32 %s1149_s26, 4  ;;  %s66_s25 = int_to_ptr.vmem [resolvable:$true] %s65_s25  ;;  %s29_s27 = int_to_ptr.vmem [resolvable:$true] %s28_s27 }
  0x12   :  { %s1003_s28 = scalar_lea.vmem %s66_s25, 1024  ;;  %p1008_p6 = scmp.lt.s32.totalorder %s66_s25, %s66_s25 }
  0x13   :  { %p1004_p5 = scmp.ne.s32.totalorder %s66_s25, %s1003_s28  ;;  %p1009_p7 = scmp.lt.s32.totalorder %s1003_s28, %s1003_s28 }
  0x15   :  { %p1010_p8 = por %p1009_p7, %p1008_p6 }
  0x17   :  { %p1011_p9 = pnand %p1010_p8, %p1004_p5 }
  0x19   :  { %1014 = shalt.err (!%p1011_p9)
}
  0x1a   :  { %71 = dma.hbm_to_vmem [thread:$0]  %s1273_s5, 1024, %s66_s25, [#allocation9], %s1146_s20, %s1146_s20, %s1147_s21  }
  0x1b   :  { %s1023_s12 = scalar_lea.vmem %s29_s27, 128  ;;  %p1028_p11 = scmp.lt.s32.totalorder %s29_s27, %s29_s27 }
  0x1c   :  { %p1024_p10 = scmp.ne.s32.totalorder %s29_s27, %s1023_s12  ;;  %p1029_p12 = scmp.lt.s32.totalorder %s1023_s12, %s1023_s12 }
  0x1e   :  { %p1030_p13 = por %p1029_p12, %p1028_p11 }
  0x20   :  { %p1031_p0 = pnand %p1030_p13, %p1024_p10 }
  0x22   :  { %1034 = shalt.err (!%p1031_p0)
}
  0x23   :  { %31 = dma.hbm_to_vmem [thread:$0]  %s1268_s0, 128, %s29_s27, [#allocation3]  }
  0x24   :  { %s1150_s14 = smov [#allocation7]  }
  0x25   :  { %s51_s15 = sshll.u32 %s1150_s14, 4  ;;  %s52_s15 = int_to_ptr.vmem [resolvable:$true] %s51_s15 }
  0x26   :  { %s1043_s16 = scalar_lea.vmem %s52_s15, 2048  ;;  %p1048_p2 = scmp.lt.s32.totalorder %s52_s15, %s52_s15 }
  0x27   :  { %p1044_p1 = scmp.ne.s32.totalorder %s52_s15, %s1043_s16  ;;  %p1049_p3 = scmp.lt.s32.totalorder %s1043_s16, %s1043_s16 }
  0x29   :  { %p1050_p4 = por %p1049_p3, %p1048_p2 }
  0x2b   :  { %p1051_p5 = pnand %p1050_p4, %p1044_p1 }
  0x2d   :  { %1054 = shalt.err (!%p1051_p5)
}
  0x2e   :  { %s1151_s5 = smov 128   ;;  %s1152_s17 = smov 8  }
  0x2f   :  { %57 = dma.hbm_to_vmem [thread:$0]  %s1271_s3, 2048, %s52_s15, [#allocation6], %s1151_s5, %s1151_s5, %s1152_s17  }
  0x30   :  { %s1153_s20 = smov [#allocation10]  }
  0x31   :  { %s79_s21 = sshll.u32 %s1153_s20, 4  ;;  %s80_s21 = int_to_ptr.vmem [resolvable:$true] %s79_s21 }
  0x32   :  { %s1063_s0 = scalar_lea.vmem %s80_s21, 2048  ;;  %p1068_p7 = scmp.lt.s32.totalorder %s80_s21, %s80_s21 }
  0x33   :  { %p1064_p6 = scmp.ne.s32.totalorder %s80_s21, %s1063_s0  ;;  %p1069_p8 = scmp.lt.s32.totalorder %s1063_s0, %s1063_s0 }
  0x35   :  { %p1070_p9 = por %p1069_p8, %p1068_p7 }
  0x37   :  { %p1071_p10 = pnand %p1070_p9, %p1064_p6 }
  0x39   :  { %1074 = shalt.err (!%p1071_p10)
}
  0x3a   :  { %85 = dma.hbm_to_vmem [thread:$0]  %s1275_s7, 2048, %s80_s21, [#allocation9], %s1151_s5, %s1151_s5, %s1152_s17  }
  0x3b   :  { %1135 = dma.done.wait [#allocation3], 128  }
  0x3c   :  { %1136 = vsyncadd [#allocation3], 4294967168 }
  0x3d   :  { %1137 = dma.done.wait [#allocation6], 4096  }
  0x3e   :  { %1138 = vsyncadd [#allocation6], 4294963200 }
  0x3f   :  { %1139 = dma.done.wait [#allocation9], 3072  }
  0x40   :  { %1140 = vsyncadd [#allocation9], 4294964224  ;;  %v895_v0 = vld [vmem:[#allocation5 + $0x78] sm:$0xff]   ;;  %v897_v2 = vld [vmem:[#allocation5 + $0x70] sm:$0xff]   ;;  %v1154_v37 = vmov 0   ;;  %v1155_v42 = vmov 0.0  }
  0x41   :  { %v896_v1 = vld [vmem:[#allocation5 + $0x38] sm:$0xff]   ;;  %829 = vmatprep.subr.bf16.mxu0 %v895_v0  ;;  %v898_v3 = vld [vmem:[#allocation5 + $0x30] sm:$0xff]   ;;  %v899_v4 = vld [vmem:[#allocation5 + $0x68] sm:$0xff]   ;;  %440 = vmatprep.mubr.bf16.mxu1 %v1154_v37  ;;  %vm1156_vm0 = vmmov 0   ;;  %s1157_s26 = smov [#allocation12]  }
  0x42   :  { %830 = vmatpush3.bf16.msra.mxu0 %v896_v1  ;;  %v900_v5 = vld [vmem:[#allocation5 + $0x28] sm:$0xff]   ;;  %v901_v6 = vld [vmem:[#allocation5 + $0x60] sm:$0xff]   ;;  %v903_v8 = vld [vmem:[#allocation5 + $0x58] sm:$0xff]   ;;  %s739_s27 = sshll.u32 %s1157_s26, 4  ;;  %s740_s27 = int_to_ptr.vmem [resolvable:$true] %s739_s27 }
  0x43   :  { %831 = vmatprep.subr.bf16.mxu0 %v897_v2  ;;  %v902_v7 = vld [vmem:[#allocation5 + $0x20] sm:$0xff]   ;;  %v904_v9 = vld [vmem:[#allocation5 + $0x18] sm:$0xff]   ;;  %v905_v10 = vld [vmem:[#allocation5 + $0x50] sm:$0xff]   ;;  %s1075_s28 = scalar_lea.vmem %s740_s27, 128  ;;  %p1080_p12 = scmp.lt.s32.totalorder %s740_s27, %s740_s27 }
  0x44   :  { %v104_v11 = vld [vmem:[#allocation2] sm:$0xff]  ;;  %v906_v12 = vld [vmem:[#allocation5 + $0x10] sm:$0xff]   ;;  %v907_v16 = vld [vmem:[#allocation5 + $0x48] sm:$0xff]   ;;  %p1076_p11 = scmp.ne.s32.totalorder %s740_s27, %s1075_s28  ;;  %p1081_p13 = scmp.lt.s32.totalorder %s1075_s28, %s1075_s28 }
  0x45   :  { %v768_v13 = vcombine.high %v104_v11, %v104_v11  ;;  %v105_v14 = vunpack.c.l.bf16 %v104_v11  ;;  %v106_v15 = vunpack.c.h.bf16 %v104_v11  ;;  %v908_v19 = vld [vmem:[#allocation5 + $0x8] sm:$0xff]   ;;  %v909_v21 = vld [vmem:[#allocation5 + $0x40] sm:$0xff]   ;;  %v767_v23 = vcombine.low %v104_v11, %v104_v11  ;;  %v913_v24 = vld [vmem:[#allocation7 + $0x74] ss:$8 sps:$4 sm:$0xff]  }
  0x46   :  { %832 = vmatpush3.bf16.msra.mxu0 %v898_v3  ;;  %v910_v22 = vld [vmem:[#allocation5] sm:$0xff]   ;;  %v915_v25 = vld [vmem:[#allocation7 + $0x70] ss:$8 sps:$4 sm:$0xff]   ;;  %408 = vmatprep.subr.bf16.mxu1 %v913_v24  ;;  %v919_v28 = vld [vmem:[#allocation7 + $0x54] ss:$8 sps:$4 sm:$0xff]   ;;  %p1082_p0 = por %p1081_p13, %p1080_p12 }
  0x47   :  { %833 = vmatprep.subr.bf16.mxu0 %v899_v4  ;;  %281 = vmatprep.mubr.bf16.mxu0 %v768_v13  ;;  %v107_v17 = vmul.f32 %v105_v14, %v105_v14  ;;  %v108_v18 = vmul.f32 %v106_v15, %v106_v15  ;;  %v916_v26 = vld [vmem:[#allocation7 + $0x64] ss:$8 sps:$4 sm:$0xff]   ;;  %v918_v27 = vld [vmem:[#allocation7 + $0x60] ss:$8 sps:$4 sm:$0xff]   ;;  %v921_v29 = vld [vmem:[#allocation7 + $0x50] ss:$8 sps:$4 sm:$0xff]  }
  0x48   :  { %409 = vmatpush1.bf16.msra.mxu1 %v915_v25  ;;  %v922_v30 = vld [vmem:[#allocation7 + $0x44] ss:$8 sps:$4 sm:$0xff]   ;;  %v924_v31 = vld [vmem:[#allocation7 + $0x40] ss:$8 sps:$4 sm:$0xff]   ;;  %v925_v32 = vld [vmem:[#allocation7 + $0x34] ss:$8 sps:$4 sm:$0xff]   ;;  %p1083_p1 = pnand %p1082_p0, %p1076_p11 }
  0x49   :  { %v109_v20 = vadd.f32 %v108_v18, %v107_v17  ;;  %410 = vmatprep.subr.bf16.mxu1 %v916_v26  ;;  %v927_v33 = vld [vmem:[#allocation7 + $0x30] ss:$8 sps:$4 sm:$0xff]   ;;  %v928_v34 = vld [vmem:[#allocation7 + $0x24] ss:$8 sps:$4 sm:$0xff]   ;;  %v930_v35 = vld [vmem:[#allocation7 + $0x20] ss:$8 sps:$4 sm:$0xff]  }
  0x4a   :  { %834 = vmatpush3.bf16.msra.mxu0 %v900_v5  ;;  %v931_v36 = vld [vmem:[#allocation7 + $0x14] ss:$8 sps:$4 sm:$0xff]   ;;  %v933_v38 = vld [vmem:[#allocation7 + $0x10] ss:$8 sps:$4 sm:$0xff]   ;;  %v934_v39 = vld [vmem:[#allocation7 + $0x4] ss:$8 sps:$4 sm:$0xff]  }
  0x4b   :  { %835 = vmatprep.subr.bf16.mxu0 %v901_v6  ;;  %110 = vadd.xlane.f32.xlu0 %v109_v20  ;;  %v936_v40 = vld [vmem:[#allocation7] ss:$8 sps:$4 sm:$0xff]   ;;  %v937_v41 = vld [vmem:[#allocation8 + $0x38] sm:$0xff]   ;;  %v938_v43 = vld [vmem:[#allocation8 + $0x30] sm:$0xff]  }
  0x4c   :  { %411 = vmatpush1.bf16.msra.mxu1 %v918_v27  ;;  %v939_v44 = vld [vmem:[#allocation8 + $0x28] sm:$0xff]   ;;  %v940_v45 = vld [vmem:[#allocation8 + $0x20] sm:$0xff]   ;;  %v941_v46 = vld [vmem:[#allocation8 + $0x18] sm:$0xff]  }
  0x4d   :  { %412 = vmatprep.subr.bf16.mxu1 %v919_v28  ;;  %v942_v47 = vld [vmem:[#allocation8 + $0x10] sm:$0xff]   ;;  %v943_v48 = vld [vmem:[#allocation8 + $0x8] sm:$0xff]   ;;  %v785_v55 = vld [vmem:[%s1270_s2] ss:$0 sm:$0xff] }
  0x4e   :  { %836 = vmatpush3.bf16.msra.mxu0 %v902_v7  ;;  %v944_v62 = vld [vmem:[#allocation8] sm:$0xff]   ;;  %v945_v63 = vld [vmem:[#allocation10 + $0x70] ss:$8 sps:$4 sm:$0xff]   ;;  %v947_v0 = vld [vmem:[#allocation10 + $0x74] ss:$8 sps:$4 sm:$0xff]   ;;  %v318_v7 = vlaneseq }
  0x4f   :  { %837 = vmatprep.subr.bf16.mxu0 %v903_v8  ;;  %v950_v1 = vld [vmem:[#allocation10 + $0x64] ss:$8 sps:$4 sm:$0xff]   ;;  %v948_v2 = vld [vmem:[#allocation10 + $0x60] ss:$8 sps:$4 sm:$0xff]   ;;  %v953_v3 = vld [vmem:[#allocation10 + $0x54] ss:$8 sps:$4 sm:$0xff]  }
  0x50   :  { %413 = vmatpush1.bf16.msra.mxu1 %v921_v29  ;;  %v951_v4 = vld [vmem:[#allocation10 + $0x50] ss:$8 sps:$4 sm:$0xff]   ;;  %v956_v5 = vld [vmem:[#allocation10 + $0x44] ss:$8 sps:$4 sm:$0xff]   ;;  %v954_v6 = vld [vmem:[#allocation10 + $0x40] ss:$8 sps:$4 sm:$0xff]  }
  0x51   :  { %414 = vmatprep.subr.bf16.mxu1 %v922_v30  ;;  %v1238_v8 = vshrl.u32 %v318_v7, 7  ;;  %v960_v24 = vld [vmem:[#allocation10 + $0x20] ss:$8 sps:$4 sm:$0xff]   ;;  %v965_v25 = vld [vmem:[#allocation10 + $0x14] ss:$8 sps:$4 sm:$0xff]  }
  0x52   :  { %838 = vmatpush3.bf16.msra.mxu0 %v904_v9  ;;  %v963_v26 = vld [vmem:[#allocation10 + $0x10] ss:$8 sps:$4 sm:$0xff]   ;;  %v968_v27 = vld [vmem:[#allocation10 + $0x4] ss:$8 sps:$4 sm:$0xff]   ;;  %v966_v28 = vld [vmem:[#allocation10] ss:$8 sps:$4 sm:$0xff]  }
  0x53   :  { %839 = vmatprep.subr.bf16.mxu0 %v905_v10  ;;  %v320_v9 = vsub.s32 0, %v1238_v8  ;;  %v316_v10 = vld [vmem:[%s1272_s4] sm:$0x3]  ;;  %v324_v11 = vsub.s32 1, %v1238_v8 }
  0x54   :  { %415 = vmatpush1.bf16.msra.mxu1 %v924_v31  ;;  %v802_v29 = vld [vmem:[%s1274_s6] ss:$0 sm:$0xff] }
  0x55   :  { %416 = vmatprep.subr.bf16.mxu1 %v925_v32  ;;  %v325_v13 = vrot.slane %v316_v10, %v324_v11 }
  0x56   :  { %840 = vmatpush3.bf16.msra.mxu0 %v906_v12  ;;  %v321_v12 = vrot.slane %v316_v10, %v320_v9 }
  0x57   :  { %841 = vmatprep.subr.bf16.mxu0 %v907_v16 }
  0x58   :  { %417 = vmatpush1.bf16.msra.mxu1 %v927_v33 }
  0x59   :  { %418 = vmatprep.subr.bf16.mxu1 %v928_v34 }
  0x5a   :  { %842 = vmatpush3.bf16.msra.mxu0 %v908_v19 }
  0x5b   :  { %843 = vmatprep.subr.bf16.mxu0 %v909_v21  ;;  %v959_v21 = vld [vmem:[#allocation10 + $0x34] ss:$8 sps:$4 sm:$0xff]  }
  0x5c   :  { %419 = vmatpush1.bf16.msra.mxu1 %v930_v35 }
  0x5d   :  { %420 = vmatprep.subr.bf16.mxu1 %v931_v36 }
  0x5e   :  { %844 = vmatpush3.bf16.msra.mxu0 %v910_v22  ;;  %v957_v22 = vld [vmem:[#allocation10 + $0x30] ss:$8 sps:$4 sm:$0xff]  }
  0x5f   :  { %860 = vmatprep.subr.bf16.mxu0 %v1155_v42 }
  0x60   :  { %421 = vmatpush1.bf16.msra.mxu1 %v933_v38 }
  0x61   :  { %282 = vmatmul.mubr.bf16.vlgmr.msra.gmra.mxu0 %v767_v23  ;;  %422 = vmatprep.subr.bf16.mxu1 %v934_v39  ;;  %v962_v23 = vld [vmem:[#allocation10 + $0x24] ss:$8 sps:$4 sm:$0xff]  }
  0x62   :  { %861 = vmatpush3.bf16.msra.mxu0 %v937_v41  ;;  %876 = vmatprep.mubr.msk.bf16.mxu0 %vm1156_vm0, %v1155_v42 }
  0x63   :  { %862 = vmatprep.subr.bf16.mxu0 %v1155_v42 }
  0x64   :  { %423 = vmatpush1.bf16.msra.mxu1 %v936_v40 }
  0x65   :  { %673 = vmatprep.subr.bf16.mxu1 %v947_v0 }
  0x66   :  { %863 = vmatpush3.bf16.msra.mxu0 %v938_v43 }
  0x67   :  { %864 = vmatprep.subr.bf16.mxu0 %v1155_v42 }
  0x6a   :  { %865 = vmatpush3.bf16.msra.mxu0 %v939_v44 }
  0x6b   :  { %866 = vmatprep.subr.bf16.mxu0 %v1155_v42 }
  0x6e   :  { %867 = vmatpush3.bf16.msra.mxu0 %v940_v45 }
  0x6f   :  { %868 = vmatprep.subr.bf16.mxu0 %v1155_v42 }
  0x72   :  { %869 = vmatpush3.bf16.msra.mxu0 %v941_v46 }
  0x73   :  { %870 = vmatprep.subr.bf16.mxu0 %v1155_v42 }
  0x76   :  { %871 = vmatpush3.bf16.msra.mxu0 %v942_v47 }
  0x77   :  { %872 = vmatprep.subr.bf16.mxu0 %v1155_v42 }
  0x7a   :  { %873 = vmatpush3.bf16.msra.mxu0 %v943_v48 }
  0x7b   :  { %874 = vmatprep.subr.bf16.mxu0 %v1155_v42 }
  0x7e   :  { %875 = vmatpush3.bf16.msra.mxu0 %v944_v62 }
  0xd4   :  { %v111_v49 = vpop.xlane.xlu0 %110 }
  0xd5   :  { %v112_v50 = vmax.f32 %v111_v49, 1e-24 }
  0xd7   :  { %969 = vrsqrt.f32 %v112_v50 }
  0xe4   :  { %v970_v52 = vpop.eup %969 }
 0x121   :  { %v845_v51 = vpop.f32.mrf.mxu0 }
 0x123   :  { %v846_v53 = vpop.f32.mrf.mxu0 }
 0x124   :  { %v847_v54 = vadd.f32 %v846_v53, %v845_v51 }
 0x125   :  { %v848_v56 = vpop.f32.mrf.mxu0 }
 0x126   :  { %v289_v57 = vmul.f32 %v970_v52, %v847_v54 }
 0x127   :  { %v849_v58 = vpop.f32.mrf.mxu0 }
 0x128   :  { %v297_v59 = vadd.f32 %v785_v55, %v289_v57 }
 0x12a   :  { %971 = vtanh.f32 %v297_v59 }
 0x137   :  { %v972_v60 = vpop.eup %971 }
 0x138   :  { %v299_v61 = vpack.c.bf16 %v972_v60, %v972_v60 }
 0x13a   :  { %441 = vmatmul.mubr.bf16.vlgmr.msra.gmra.mxu1 %v299_v61 }
 0x13b   :  { %705 = vmatprep.mubr.bf16.mxu1 %v1154_v37  ;;  %674 = vmatpush1.bf16.msra.mxu1 %v945_v63 }
 0x13c   :  { %675 = vmatprep.subr.bf16.mxu1 %v950_v1 }
 0x13f   :  { %676 = vmatpush1.bf16.msra.mxu1 %v948_v2 }
 0x140   :  { %677 = vmatprep.subr.bf16.mxu1 %v953_v3 }
 0x143   :  { %678 = vmatpush1.bf16.msra.mxu1 %v951_v4 }
 0x144   :  { %679 = vmatprep.subr.bf16.mxu1 %v956_v5 }
 0x147   :  { %680 = vmatpush1.bf16.msra.mxu1 %v954_v6 }
 0x148   :  { %681 = vmatprep.subr.bf16.mxu1 %v959_v21 }
 0x14b   :  { %682 = vmatpush1.bf16.msra.mxu1 %v957_v22 }
 0x14c   :  { %683 = vmatprep.subr.bf16.mxu1 %v962_v23 }
 0x14f   :  { %684 = vmatpush1.bf16.msra.mxu1 %v960_v24 }
 0x150   :  { %685 = vmatprep.subr.bf16.mxu1 %v965_v25 }
 0x153   :  { %686 = vmatpush1.bf16.msra.mxu1 %v963_v26 }
 0x154   :  { %687 = vmatprep.subr.bf16.mxu1 %v968_v27 }
 0x157   :  { %688 = vmatpush1.bf16.msra.mxu1 %v966_v28 }
 0x1fa   :  { %v442_v14 = vpop.f32.mrf.mxu1 }
 0x1fb   :  { %v443_v15 = vadd.f32 %v442_v14, %v321_v12 }
 0x1fc   :  { %v444_v16 = vpop.f32.mrf.mxu1 }
 0x1fd   :  { %v451_v17 = vpack.c.bf16 %v443_v15, %v443_v15  ;;  %449 = vst [vmem:[#allocation12] sm:$0xff] %v443_v15  ;;  %v445_v18 = vadd.f32 %v444_v16, %v325_v13 }
 0x1fe   :  { %v446_v19 = vpop.f32.mrf.mxu1 }
 0x1ff   :  { %450 = vst [vmem:[#allocation14] sm:$0xff] %v445_v18  ;;  %877 = vmatmul.mubr.bf16.vlgmr.msra.gmra.mxu0 %v451_v17 }
 0x200   :  { %v447_v20 = vpop.f32.mrf.mxu1 }
 0x2bf   :  { %v557_v30 = vpop.f32.mrf.mxu0 }
 0x2c0   :  { %v558_v31 = vadd.f32 %v802_v29, %v557_v30 }
 0x2c1   :  { %v878_v32 = vpop.f32.mrf.mxu0 }
 0x2c2   :  { %973 = vtanh.f32 %v558_v31 }
 0x2c3   :  { %v560_v33 = vpop.f32.mrf.mxu0 }
 0x2c5   :  { %v879_v34 = vpop.f32.mrf.mxu0 }
 0x2cf   :  { %v974_v35 = vpop.eup %973 }
 0x2d0   :  { %v564_v36 = vpack.c.bf16 %v974_v35, %v974_v35 }
 0x2d2   :  { %706 = vmatmul.mubr.bf16.vlgmr.msra.gmra.mxu1 %v564_v36 }
 0x2d3   :  { %1086 = shalt.err (!%p1083_p1)
}
 0x2d4   :  { %742 = dma.vmem_to_hbm [thread:$0]  %s740_s27, 128, %s1278_s10, [#allocation13]  }
 0x2d5   :  { %s1158_s30 = smov [#allocation14]  }
 0x2d6   :  { %s749_s12 = sshll.u32 %s1158_s30, 4  ;;  %s750_s12 = int_to_ptr.vmem [resolvable:$true] %s749_s12 }
 0x2d7   :  { %s1095_s1 = scalar_lea.vmem %s750_s12, 128  ;;  %p1100_p3 = scmp.lt.s32.totalorder %s750_s12, %s750_s12 }
 0x2d8   :  { %p1096_p2 = scmp.ne.s32.totalorder %s750_s12, %s1095_s1  ;;  %p1101_p4 = scmp.lt.s32.totalorder %s1095_s1, %s1095_s1 }
 0x2da   :  { %p1102_p5 = por %p1101_p4, %p1100_p3 }
 0x2dc   :  { %p1103_p6 = pnand %p1102_p5, %p1096_p2 }
 0x2de   :  { %1106 = shalt.err (!%p1103_p6)
}
 0x2df   :  { %752 = dma.vmem_to_hbm [thread:$0]  %s750_s12, 128, %s1279_s11, [#allocation13]   ;;  %v581_v37 = vld [vmem:[%s1276_s8] sm:$0x3] }
 0x2e0   :  { %v586_v38 = vrot.slane %v581_v37, %v320_v9  ;;  %v590_v39 = vrot.slane %v581_v37, %v324_v11  ;;  %s1159_s10 = smov [#allocation11]  }
 0x2e1   :  { %s729_s5 = sshll.u32 %s1159_s10, 4  ;;  %s730_s5 = int_to_ptr.vmem [resolvable:$true] %s729_s5 }
 0x2e2   :  { %s1115_s11 = scalar_lea.vmem %s730_s5, 128  ;;  %p1120_p8 = scmp.lt.s32.totalorder %s730_s5, %s730_s5 }
 0x2e3   :  { %p1116_p7 = scmp.ne.s32.totalorder %s730_s5, %s1115_s11  ;;  %p1121_p9 = scmp.lt.s32.totalorder %s1115_s11, %s1115_s11 }
 0x2e5   :  { %p1122_p10 = por %p1121_p9, %p1120_p8 }
 0x2e7   :  { %p1123_p11 = pnand %p1122_p10, %p1116_p7 }
 0x392   :  { %v707_v40 = vpop.f32.mrf.mxu1 }
 0x393   :  { %v708_v42 = vadd.f32 %v707_v40, %v586_v38 }
 0x394   :  { %v709_v41 = vpop.f32.mrf.mxu1 }
 0x395   :  { %v710_v43 = vadd.f32 %v709_v41, %v590_v39 }
 0x396   :  { %v711_v44 = vpop.f32.mrf.mxu1 }
 0x397   :  { %v828_v45 = vpack.c.bf16 %v710_v43, %v708_v42 }
 0x398   :  { %v712_v46 = vpop.f32.mrf.mxu1 }
 0x399   :  { %722 = vst [vmem:[#allocation11] sm:$0xff] %v828_v45 }
 0x39a   :  { %1126 = shalt.err (!%p1123_p11)
}
 0x39b   :  { %732 = dma.vmem_to_hbm [thread:$0]  %s730_s5, 128, %s1277_s9, [#allocation4]  }
 0x39c   :  { %1141 = dma.done.wait [#allocation4], 128  }
 0x39d   :  { %1142 = vsyncadd [#allocation4], 4294967168 }
 0x39e   :  { %1143 = dma.done.wait [#allocation13], 256  }
 0x39f   :  { %1144 = vsyncadd [#allocation13], 4294967040 }
 0x3a0   :  { %762 = vsyncpa [#allocation3], 1 }
 0x3a1   :  { %763 = vsyncpa [#allocation6], 1 }
 0x3a2   :  { %764 = vsyncpa [#allocation9], 1 }
 0x3a3   :  { %765 = vsyncpa [#allocation4], 1 }
 0x3a4   :  { %766 = vsyncpa [#allocation13], 1 }

</bundles_post_ra>
